<compile_context>
chip_gen: v7x
topology: tpu7x:2x2x1
jax: 0.10.0
libtpu: 0.0.40
codegen_flags: <defaults>
</compile_context>

<pallas_src>
import jax
import jax.numpy as jnp
from jax.experimental import pallas as pl
from jax.experimental.pallas import tpu as pltpu

# Small, module-consistent sizes.
B, T, D, H, A = 2, 8, 4, 32, 2
G = 4 * H                       # 128 gate lanes (one full lane group)
BP = 8                          # batch padded to one sublane group
LANES = 128

# Packed-slab row offsets (all multiples of 8 -> aligned full-tile slices).
R_X = 0                         # (T*BP, 128): x in lanes 0:D, const-1 in lane D
R_WIH = R_X + T * BP            # (128, 128):  rows 0:D = w_ih^T, row D = gate bias
R_WHH = R_WIH + LANES           # (H, 128):    w_hh^T
R_WOUT = R_WHH + H              # (H, 128):    lanes 0:A = w_out^T
R_BOUT = R_WOUT + H             # (BP, 128):   lanes 0:A = b_out
SLAB_ROWS = R_BOUT + BP         # 264


def lstm_policy_kernel(slab_ref, out_ref):
    """Whole-problem kernel; everything resident in VMEM / vregs.

    slab_ref: (264, 128) f32 packed inputs (see row offsets above)
    out_ref:  (8, 128)   f32 packed outputs: lanes 0:H = h_T, H:H+A = logits,
                          H+A:H+2A = probs (rows 0:B valid)
    """
    x_wide = slab_ref[R_X:R_X + T * BP, :]        # (64, 128)
    w_ih = slab_ref[R_WIH:R_WIH + LANES, :]       # (128, 128)  incl. bias row
    w_hh = slab_ref[R_WHH:R_WHH + H, :]           # (32, 128)
    w_out = slab_ref[R_WOUT:R_WOUT + H, :]        # (32, 128)
    b_out = slab_ref[R_BOUT:R_BOUT + BP, :]       # (8, 128)

    # Hoisted input projection with the gate bias folded in via the constant-1
    # lane: ONE full-tile MXU call covering all T steps. Stays in vregs.
    xg = jnp.dot(x_wide, w_ih, preferred_element_type=jnp.float32)  # (64, 128)

    h = jnp.zeros((BP, H), jnp.float32)
    c = jnp.zeros((BP, H), jnp.float32)
    # T is small and static: full static unroll so the LLO scheduler sees across
    # steps and every xg slice below is a static, sublane-aligned vreg read.
    for t in range(T):
        gates = xg[t * BP:(t + 1) * BP, :] + jnp.dot(
            h, w_hh, preferred_element_type=jnp.float32)            # (8, 128)
        # Single full-tile EUP pass; g-gate columns were pre-scaled by 2 in the
        # wrapper, so tanh(x) = 2*sigmoid(2x) - 1 comes out of the same sigmoid.
        sig = jax.nn.sigmoid(gates)
        i_g = sig[:, 0 * H:1 * H]
        f_g = sig[:, 1 * H:2 * H]
        g_g = 2.0 * sig[:, 2 * H:3 * H] - 1.0
        o_g = sig[:, 3 * H:4 * H]
        c = f_g * c + i_g * g_g
        h = o_g * jnp.tanh(c)

    logits_wide = jnp.dot(h, w_out, preferred_element_type=jnp.float32) + b_out
    logits = logits_wide[:, 0:A]                                     # (8, A)
    m = jnp.max(logits, axis=-1, keepdims=True)
    e = jnp.exp(logits - m)
    probs = e / jnp.sum(e, axis=-1, keepdims=True)   # exact: probs sum to 1

    # Single lane-dense (8,128) block, one unmasked vst + one writeback DMA.
    out_ref[...] = jnp.concatenate(
        [h, logits, probs,
         jnp.zeros((BP, LANES - H - 2 * A), jnp.float32)], axis=-1)


def pack_lstm_policy_params(w_ih, w_hh, b_ih, b_hh, w_out, b_out):
    """Call-invariant weight portion of the slab: pack ONCE, reuse every call."""
    f32 = jnp.float32
    # Pre-scale g-gate columns by 2 (single-sigmoid trick in the kernel).
    gscale = jnp.ones((G,), f32).at[2 * H:3 * H].set(2.0)
    w_ih_t = w_ih.T.astype(f32) * gscale                 # (D, 4H)
    w_hh_t = w_hh.T.astype(f32) * gscale                 # (H, 4H)
    b = (b_ih + b_hh).astype(f32) * gscale               # (4H,)

    w_ih_wide = jnp.zeros((LANES, LANES), f32)
    w_ih_wide = w_ih_wide.at[0:D, :].set(w_ih_t)
    w_ih_wide = w_ih_wide.at[D, :].set(b)                # bias rides the 1-lane

    w_out_blk = jnp.zeros((H, LANES), f32).at[:, 0:A].set(w_out.T.astype(f32))
    b_out_blk = jnp.zeros((BP, LANES), f32).at[:, 0:A].set(
        jnp.broadcast_to(b_out.astype(f32), (BP, A)))

    return jnp.concatenate([w_ih_wide, w_hh_t, w_out_blk, b_out_blk], axis=0)


@jax.jit
def lstm_policy(x_btd, w_slab):
    """x_btd: (B, T, D) float32 (PyTorch batch_first). Returns (logits, probs, h_T)."""
    # Time-major, batch padded to 8 rows per step, constant-1 lane D for the bias.
    x_tbd = jnp.transpose(x_btd.astype(jnp.float32), (1, 0, 2))      # (T, B, D)
    x_aug = jnp.concatenate(
        [x_tbd, jnp.ones((T, B, 1), jnp.float32)], axis=-1)          # (T, B, D+1)
    x_wide = jnp.pad(
        x_aug, ((0, 0), (0, BP - B), (0, LANES - (D + 1)))).reshape(T * BP, LANES)

    slab = jnp.concatenate([x_wide, w_slab], axis=0)                 # (264, 128)

    vmem = pl.BlockSpec(memory_space=pltpu.MemorySpace.VMEM)
    packed = pl.pallas_call(
        lstm_policy_kernel,
        out_shape=jax.ShapeDtypeStruct((BP, LANES), jnp.float32),
        in_specs=[vmem],
        out_specs=vmem,
    )(slab)

    h_T = packed[0:B, 0:H]
    logits = packed[0:B, H:H + A]
    probs = packed[0:B, H + A:H + 2 * A]
    return logits, probs, h_T


def lstm_policy_ref(x_btd, w_ih, w_hh, b_ih, b_hh, w_out, b_out):
    """Pure-JAX reference mirroring torch.nn.LSTM + Linear + softmax."""
    h = jnp.zeros((B, H), jnp.float32)
    c = jnp.zeros((B, H), jnp.float32)
    for t in range(T):
        gates = x_btd[:, t, :] @ w_ih.T + h @ w_hh.T + b_ih + b_hh
        i_g = jax.nn.sigmoid(gates[:, 0 * H:1 * H])
        f_g = jax.nn.sigmoid(gates[:, 1 * H:2 * H])
        g_g = jnp.tanh(gates[:, 2 * H:3 * H])
        o_g = jax.nn.sigmoid(gates[:, 3 * H:4 * H])
        c = f_g * c + i_g * g_g
        h = o_g * jnp.tanh(c)
    logits = h @ w_out.T + b_out
    return logits, jax.nn.softmax(logits, axis=-1), h


if __name__ == "__main__":
    key = jax.random.PRNGKey(0)
    ks = jax.random.split(key, 7)
    scale = 1.0 / jnp.sqrt(jnp.float32(H))   # PyTorch LSTM default init range

    # Observations: one-hot joint previous actions, shape (B, T, D).
    idx = jax.random.randint(ks[0], (B, T), 0, D)
    x = jax.nn.one_hot(idx, D, dtype=jnp.float32)

    w_ih = jax.random.uniform(ks[1], (4 * H, D), jnp.float32, -scale, scale)
    w_hh = jax.random.uniform(ks[2], (4 * H, H), jnp.float32, -scale, scale)
    b_ih = jax.random.uniform(ks[3], (4 * H,), jnp.float32, -scale, scale)
    b_hh = jax.random.uniform(ks[4], (4 * H,), jnp.float32, -scale, scale)
    w_out = jax.random.uniform(ks[5], (A, H), jnp.float32, -scale, scale)
    b_out = jax.random.uniform(ks[6], (A,), jnp.float32, -scale, scale)

    # Pack the call-invariant weights once; only x is re-packed per call.
    w_slab = jax.block_until_ready(
        pack_lstm_policy_params(w_ih, w_hh, b_ih, b_hh, w_out, b_out))

    logits, probs, h_T = jax.block_until_ready(lstm_policy(x, w_slab))

    ref_logits, ref_probs, ref_h = lstm_policy_ref(
        x, w_ih, w_hh, b_ih, b_hh, w_out, b_out)

    assert jnp.allclose(logits, ref_logits, atol=1e-4, rtol=1e-4)
    assert jnp.allclose(probs, ref_probs, atol=1e-4, rtol=1e-4)
    assert jnp.allclose(h_T, ref_h, atol=1e-4, rtol=1e-4)

    print("KERNEL_OK")
</pallas_src>

<mosaic_0001>
module attributes {stable_mosaic.version = 11 : i64} {
  func.func @lstm_policy_kernel(%arg0: memref<264x128xf32, #tpu.memory_space<vmem>>, %arg1: memref<8x128xf32, #tpu.memory_space<vmem>>) attributes {dimension_semantics = [], scalar_prefetch = 0 : i64, scratch_operands = 0 : i64, tpu.core_type = #tpu.core_type<tc>} {
    %c0 = arith.constant 0 : index
    %c0_0 = arith.constant 0 : index
    %0 = vector.load %arg0[%c0, %c0_0] : memref<264x128xf32, #tpu.memory_space<vmem>>, vector<64x128xf32>
    %c64 = arith.constant 64 : index
    %c0_1 = arith.constant 0 : index
    %1 = vector.load %arg0[%c64, %c0_1] : memref<264x128xf32, #tpu.memory_space<vmem>>, vector<128x128xf32>
    %c192 = arith.constant 192 : index
    %c0_2 = arith.constant 0 : index
    %2 = vector.load %arg0[%c192, %c0_2] : memref<264x128xf32, #tpu.memory_space<vmem>>, vector<32x128xf32>
    %c224 = arith.constant 224 : index
    %c0_3 = arith.constant 0 : index
    %3 = vector.load %arg0[%c224, %c0_3] : memref<264x128xf32, #tpu.memory_space<vmem>>, vector<32x128xf32>
    %c256 = arith.constant 256 : index
    %c0_4 = arith.constant 0 : index
    %4 = vector.load %arg0[%c256, %c0_4] : memref<264x128xf32, #tpu.memory_space<vmem>>, vector<8x128xf32>
    %cst = arith.constant dense<0.000000e+00> : vector<64x128xf32>
    %5 = tpu.matmul %0, %1, %cst {dimension_numbers = #tpu.dot_dimension_numbers<[1], [0], [0], [1], [0, 0, 1, 1], [], []>} : vector<64x128xf32>, vector<128x128xf32>, vector<64x128xf32> -> vector<64x128xf32>
    %cst_5 = arith.constant 0.000000e+00 : f32
    %6 = vector.broadcast %cst_5 : f32 to vector<8x32xf32>
    %cst_6 = arith.constant 0.000000e+00 : f32
    %7 = vector.broadcast %cst_6 : f32 to vector<8x32xf32>
    %8 = vector.extract_strided_slice %5 {offsets = [0, 0], sizes = [8, 128], strides = [1, 1]} : vector<64x128xf32> to vector<8x128xf32>
    %cst_7 = arith.constant dense<0.000000e+00> : vector<8x128xf32>
    %9 = tpu.matmul %6, %2, %cst_7 {dimension_numbers = #tpu.dot_dimension_numbers<[1], [0], [0], [1], [0, 0, 1, 1], [], []>} : vector<8x32xf32>, vector<32x128xf32>, vector<8x128xf32> -> vector<8x128xf32>
    %10 = arith.addf %8, %9 : vector<8x128xf32>
    %11 = arith.negf %10 : vector<8x128xf32>
    %12 = math.exp %11 : vector<8x128xf32>
    %cst_8 = arith.constant 1.000000e+00 : f32
    %13 = vector.broadcast %cst_8 : f32 to vector<8x128xf32>
    %14 = arith.addf %13, %12 : vector<8x128xf32>
    %15 = arith.divf %13, %14 : vector<8x128xf32>
    %16 = vector.extract_strided_slice %15 {offsets = [0, 0], sizes = [8, 32], strides = [1, 1]} : vector<8x128xf32> to vector<8x32xf32>
    %17 = vector.extract_strided_slice %15 {offsets = [0, 32], sizes = [8, 32], strides = [1, 1]} : vector<8x128xf32> to vector<8x32xf32>
    %18 = vector.extract_strided_slice %15 {offsets = [0, 64], sizes = [8, 32], strides = [1, 1]} : vector<8x128xf32> to vector<8x32xf32>
    %cst_9 = arith.constant 2.000000e+00 : f32
    %19 = vector.broadcast %cst_9 : f32 to vector<8x32xf32>
    %20 = arith.mulf %19, %18 : vector<8x32xf32>
    %cst_10 = arith.constant 1.000000e+00 : f32
    %21 = vector.broadcast %cst_10 : f32 to vector<8x32xf32>
    %22 = arith.subf %20, %21 : vector<8x32xf32>
    %23 = vector.extract_strided_slice %15 {offsets = [0, 96], sizes = [8, 32], strides = [1, 1]} : vector<8x128xf32> to vector<8x32xf32>
    %24 = arith.mulf %17, %7 : vector<8x32xf32>
    %25 = arith.mulf %16, %22 : vector<8x32xf32>
    %26 = arith.addf %24, %25 : vector<8x32xf32>
    %27 = math.tanh %26 : vector<8x32xf32>
    %28 = arith.mulf %23, %27 : vector<8x32xf32>
    %29 = vector.extract_strided_slice %5 {offsets = [8, 0], sizes = [8, 128], strides = [1, 1]} : vector<64x128xf32> to vector<8x128xf32>
    %cst_11 = arith.constant dense<0.000000e+00> : vector<8x128xf32>
    %30 = tpu.matmul %28, %2, %cst_11 {dimension_numbers = #tpu.dot_dimension_numbers<[1], [0], [0], [1], [0, 0, 1, 1], [], []>} : vector<8x32xf32>, vector<32x128xf32>, vector<8x128xf32> -> vector<8x128xf32>
    %31 = arith.addf %29, %30 : vector<8x128xf32>
    %32 = arith.negf %31 : vector<8x128xf32>
    %33 = math.exp %32 : vector<8x128xf32>
    %cst_12 = arith.constant 1.000000e+00 : f32
    %34 = vector.broadcast %cst_12 : f32 to vector<8x128xf32>
    %35 = arith.addf %34, %33 : vector<8x128xf32>
    %36 = arith.divf %34, %35 : vector<8x128xf32>
    %37 = vector.extract_strided_slice %36 {offsets = [0, 0], sizes = [8, 32], strides = [1, 1]} : vector<8x128xf32> to vector<8x32xf32>
    %38 = vector.extract_strided_slice %36 {offsets = [0, 32], sizes = [8, 32], strides = [1, 1]} : vector<8x128xf32> to vector<8x32xf32>
    %39 = vector.extract_strided_slice %36 {offsets = [0, 64], sizes = [8, 32], strides = [1, 1]} : vector<8x128xf32> to vector<8x32xf32>
    %cst_13 = arith.constant 2.000000e+00 : f32
    %40 = vector.broadcast %cst_13 : f32 to vector<8x32xf32>
    %41 = arith.mulf %40, %39 : vector<8x32xf32>
    %cst_14 = arith.constant 1.000000e+00 : f32
    %42 = vector.broadcast %cst_14 : f32 to vector<8x32xf32>
    %43 = arith.subf %41, %42 : vector<8x32xf32>
    %44 = vector.extract_strided_slice %36 {offsets = [0, 96], sizes = [8, 32], strides = [1, 1]} : vector<8x128xf32> to vector<8x32xf32>
    %45 = arith.mulf %38, %26 : vector<8x32xf32>
    %46 = arith.mulf %37, %43 : vector<8x32xf32>
    %47 = arith.addf %45, %46 : vector<8x32xf32>
    %48 = math.tanh %47 : vector<8x32xf32>
    %49 = arith.mulf %44, %48 : vector<8x32xf32>
    %50 = vector.extract_strided_slice %5 {offsets = [16, 0], sizes = [8, 128], strides = [1, 1]} : vector<64x128xf32> to vector<8x128xf32>
    %cst_15 = arith.constant dense<0.000000e+00> : vector<8x128xf32>
    %51 = tpu.matmul %49, %2, %cst_15 {dimension_numbers = #tpu.dot_dimension_numbers<[1], [0], [0], [1], [0, 0, 1, 1], [], []>} : vector<8x32xf32>, vector<32x128xf32>, vector<8x128xf32> -> vector<8x128xf32>
    %52 = arith.addf %50, %51 : vector<8x128xf32>
    %53 = arith.negf %52 : vector<8x128xf32>
    %54 = math.exp %53 : vector<8x128xf32>
    %cst_16 = arith.constant 1.000000e+00 : f32
    %55 = vector.broadcast %cst_16 : f32 to vector<8x128xf32>
    %56 = arith.addf %55, %54 : vector<8x128xf32>
    %57 = arith.divf %55, %56 : vector<8x128xf32>
    %58 = vector.extract_strided_slice %57 {offsets = [0, 0], sizes = [8, 32], strides = [1, 1]} : vector<8x128xf32> to vector<8x32xf32>
    %59 = vector.extract_strided_slice %57 {offsets = [0, 32], sizes = [8, 32], strides = [1, 1]} : vector<8x128xf32> to vector<8x32xf32>
    %60 = vector.extract_strided_slice %57 {offsets = [0, 64], sizes = [8, 32], strides = [1, 1]} : vector<8x128xf32> to vector<8x32xf32>
    %cst_17 = arith.constant 2.000000e+00 : f32
    %61 = vector.broadcast %cst_17 : f32 to vector<8x32xf32>
    %62 = arith.mulf %61, %60 : vector<8x32xf32>
    %cst_18 = arith.constant 1.000000e+00 : f32
    %63 = vector.broadcast %cst_18 : f32 to vector<8x32xf32>
    %64 = arith.subf %62, %63 : vector<8x32xf32>
    %65 = vector.extract_strided_slice %57 {offsets = [0, 96], sizes = [8, 32], strides = [1, 1]} : vector<8x128xf32> to vector<8x32xf32>
    %66 = arith.mulf %59, %47 : vector<8x32xf32>
    %67 = arith.mulf %58, %64 : vector<8x32xf32>
    %68 = arith.addf %66, %67 : vector<8x32xf32>
    %69 = math.tanh %68 : vector<8x32xf32>
    %70 = arith.mulf %65, %69 : vector<8x32xf32>
    %71 = vector.extract_strided_slice %5 {offsets = [24, 0], sizes = [8, 128], strides = [1, 1]} : vector<64x128xf32> to vector<8x128xf32>
    %cst_19 = arith.constant dense<0.000000e+00> : vector<8x128xf32>
    %72 = tpu.matmul %70, %2, %cst_19 {dimension_numbers = #tpu.dot_dimension_numbers<[1], [0], [0], [1], [0, 0, 1, 1], [], []>} : vector<8x32xf32>, vector<32x128xf32>, vector<8x128xf32> -> vector<8x128xf32>
    %73 = arith.addf %71, %72 : vector<8x128xf32>
    %74 = arith.negf %73 : vector<8x128xf32>
    %75 = math.exp %74 : vector<8x128xf32>
    %cst_20 = arith.constant 1.000000e+00 : f32
    %76 = vector.broadcast %cst_20 : f32 to vector<8x128xf32>
    %77 = arith.addf %76, %75 : vector<8x128xf32>
    %78 = arith.divf %76, %77 : vector<8x128xf32>
    %79 = vector.extract_strided_slice %78 {offsets = [0, 0], sizes = [8, 32], strides = [1, 1]} : vector<8x128xf32> to vector<8x32xf32>
    %80 = vector.extract_strided_slice %78 {offsets = [0, 32], sizes = [8, 32], strides = [1, 1]} : vector<8x128xf32> to vector<8x32xf32>
    %81 = vector.extract_strided_slice %78 {offsets = [0, 64], sizes = [8, 32], strides = [1, 1]} : vector<8x128xf32> to vector<8x32xf32>
    %cst_21 = arith.constant 2.000000e+00 : f32
    %82 = vector.broadcast %cst_21 : f32 to vector<8x32xf32>
    %83 = arith.mulf %82, %81 : vector<8x32xf32>
    %cst_22 = arith.constant 1.000000e+00 : f32
    %84 = vector.broadcast %cst_22 : f32 to vector<8x32xf32>
    %85 = arith.subf %83, %84 : vector<8x32xf32>
    %86 = vector.extract_strided_slice %78 {offsets = [0, 96], sizes = [8, 32], strides = [1, 1]} : vector<8x128xf32> to vector<8x32xf32>
    %87 = arith.mulf %80, %68 : vector<8x32xf32>
    %88 = arith.mulf %79, %85 : vector<8x32xf32>
    %89 = arith.addf %87, %88 : vector<8x32xf32>
    %90 = math.tanh %89 : vector<8x32xf32>
    %91 = arith.mulf %86, %90 : vector<8x32xf32>
    %92 = vector.extract_strided_slice %5 {offsets = [32, 0], sizes = [8, 128], strides = [1, 1]} : vector<64x128xf32> to vector<8x128xf32>
    %cst_23 = arith.constant dense<0.000000e+00> : vector<8x128xf32>
    %93 = tpu.matmul %91, %2, %cst_23 {dimension_numbers = #tpu.dot_dimension_numbers<[1], [0], [0], [1], [0, 0, 1, 1], [], []>} : vector<8x32xf32>, vector<32x128xf32>, vector<8x128xf32> -> vector<8x128xf32>
    %94 = arith.addf %92, %93 : vector<8x128xf32>
    %95 = arith.negf %94 : vector<8x128xf32>
    %96 = math.exp %95 : vector<8x128xf32>
    %cst_24 = arith.constant 1.000000e+00 : f32
    %97 = vector.broadcast %cst_24 : f32 to vector<8x128xf32>
    %98 = arith.addf %97, %96 : vector<8x128xf32>
    %99 = arith.divf %97, %98 : vector<8x128xf32>
    %100 = vector.extract_strided_slice %99 {offsets = [0, 0], sizes = [8, 32], strides = [1, 1]} : vector<8x128xf32> to vector<8x32xf32>
    %101 = vector.extract_strided_slice %99 {offsets = [0, 32], sizes = [8, 32], strides = [1, 1]} : vector<8x128xf32> to vector<8x32xf32>
    %102 = vector.extract_strided_slice %99 {offsets = [0, 64], sizes = [8, 32], strides = [1, 1]} : vector<8x128xf32> to vector<8x32xf32>
    %cst_25 = arith.constant 2.000000e+00 : f32
    %103 = vector.broadcast %cst_25 : f32 to vector<8x32xf32>
    %104 = arith.mulf %103, %102 : vector<8x32xf32>
    %cst_26 = arith.constant 1.000000e+00 : f32
    %105 = vector.broadcast %cst_26 : f32 to vector<8x32xf32>
    %106 = arith.subf %104, %105 : vector<8x32xf32>
    %107 = vector.extract_strided_slice %99 {offsets = [0, 96], sizes = [8, 32], strides = [1, 1]} : vector<8x128xf32> to vector<8x32xf32>
    %108 = arith.mulf %101, %89 : vector<8x32xf32>
    %109 = arith.mulf %100, %106 : vector<8x32xf32>
    %110 = arith.addf %108, %109 : vector<8x32xf32>
    %111 = math.tanh %110 : vector<8x32xf32>
    %112 = arith.mulf %107, %111 : vector<8x32xf32>
    %113 = vector.extract_strided_slice %5 {offsets = [40, 0], sizes = [8, 128], strides = [1, 1]} : vector<64x128xf32> to vector<8x128xf32>
    %cst_27 = arith.constant dense<0.000000e+00> : vector<8x128xf32>
    %114 = tpu.matmul %112, %2, %cst_27 {dimension_numbers = #tpu.dot_dimension_numbers<[1], [0], [0], [1], [0, 0, 1, 1], [], []>} : vector<8x32xf32>, vector<32x128xf32>, vector<8x128xf32> -> vector<8x128xf32>
    %115 = arith.addf %113, %114 : vector<8x128xf32>
    %116 = arith.negf %115 : vector<8x128xf32>
    %117 = math.exp %116 : vector<8x128xf32>
    %cst_28 = arith.constant 1.000000e+00 : f32
    %118 = vector.broadcast %cst_28 : f32 to vector<8x128xf32>
    %119 = arith.addf %118, %117 : vector<8x128xf32>
    %120 = arith.divf %118, %119 : vector<8x128xf32>
    %121 = vector.extract_strided_slice %120 {offsets = [0, 0], sizes = [8, 32], strides = [1, 1]} : vector<8x128xf32> to vector<8x32xf32>
    %122 = vector.extract_strided_slice %120 {offsets = [0, 32], sizes = [8, 32], strides = [1, 1]} : vector<8x128xf32> to vector<8x32xf32>
    %123 = vector.extract_strided_slice %120 {offsets = [0, 64], sizes = [8, 32], strides = [1, 1]} : vector<8x128xf32> to vector<8x32xf32>
    %cst_29 = arith.constant 2.000000e+00 : f32
    %124 = vector.broadcast %cst_29 : f32 to vector<8x32xf32>
    %125 = arith.mulf %124, %123 : vector<8x32xf32>
    %cst_30 = arith.constant 1.000000e+00 : f32
    %126 = vector.broadcast %cst_30 : f32 to vector<8x32xf32>
    %127 = arith.subf %125, %126 : vector<8x32xf32>
    %128 = vector.extract_strided_slice %120 {offsets = [0, 96], sizes = [8, 32], strides = [1, 1]} : vector<8x128xf32> to vector<8x32xf32>
    %129 = arith.mulf %122, %110 : vector<8x32xf32>
    %130 = arith.mulf %121, %127 : vector<8x32xf32>
    %131 = arith.addf %129, %130 : vector<8x32xf32>
    %132 = math.tanh %131 : vector<8x32xf32>
    %133 = arith.mulf %128, %132 : vector<8x32xf32>
    %134 = vector.extract_strided_slice %5 {offsets = [48, 0], sizes = [8, 128], strides = [1, 1]} : vector<64x128xf32> to vector<8x128xf32>
    %cst_31 = arith.constant dense<0.000000e+00> : vector<8x128xf32>
    %135 = tpu.matmul %133, %2, %cst_31 {dimension_numbers = #tpu.dot_dimension_numbers<[1], [0], [0], [1], [0, 0, 1, 1], [], []>} : vector<8x32xf32>, vector<32x128xf32>, vector<8x128xf32> -> vector<8x128xf32>
    %136 = arith.addf %134, %135 : vector<8x128xf32>
    %137 = arith.negf %136 : vector<8x128xf32>
    %138 = math.exp %137 : vector<8x128xf32>
    %cst_32 = arith.constant 1.000000e+00 : f32
    %139 = vector.broadcast %cst_32 : f32 to vector<8x128xf32>
    %140 = arith.addf %139, %138 : vector<8x128xf32>
    %141 = arith.divf %139, %140 : vector<8x128xf32>
    %142 = vector.extract_strided_slice %141 {offsets = [0, 0], sizes = [8, 32], strides = [1, 1]} : vector<8x128xf32> to vector<8x32xf32>
    %143 = vector.extract_strided_slice %141 {offsets = [0, 32], sizes = [8, 32], strides = [1, 1]} : vector<8x128xf32> to vector<8x32xf32>
    %144 = vector.extract_strided_slice %141 {offsets = [0, 64], sizes = [8, 32], strides = [1, 1]} : vector<8x128xf32> to vector<8x32xf32>
    %cst_33 = arith.constant 2.000000e+00 : f32
    %145 = vector.broadcast %cst_33 : f32 to vector<8x32xf32>
    %146 = arith.mulf %145, %144 : vector<8x32xf32>
    %cst_34 = arith.constant 1.000000e+00 : f32
    %147 = vector.broadcast %cst_34 : f32 to vector<8x32xf32>
    %148 = arith.subf %146, %147 : vector<8x32xf32>
    %149 = vector.extract_strided_slice %141 {offsets = [0, 96], sizes = [8, 32], strides = [1, 1]} : vector<8x128xf32> to vector<8x32xf32>
    %150 = arith.mulf %143, %131 : vector<8x32xf32>
    %151 = arith.mulf %142, %148 : vector<8x32xf32>
    %152 = arith.addf %150, %151 : vector<8x32xf32>
    %153 = math.tanh %152 : vector<8x32xf32>
    %154 = arith.mulf %149, %153 : vector<8x32xf32>
    %155 = vector.extract_strided_slice %5 {offsets = [56, 0], sizes = [8, 128], strides = [1, 1]} : vector<64x128xf32> to vector<8x128xf32>
    %cst_35 = arith.constant dense<0.000000e+00> : vector<8x128xf32>
    %156 = tpu.matmul %154, %2, %cst_35 {dimension_numbers = #tpu.dot_dimension_numbers<[1], [0], [0], [1], [0, 0, 1, 1], [], []>} : vector<8x32xf32>, vector<32x128xf32>, vector<8x128xf32> -> vector<8x128xf32>
    %157 = arith.addf %155, %156 : vector<8x128xf32>
    %158 = arith.negf %157 : vector<8x128xf32>
    %159 = math.exp %158 : vector<8x128xf32>
    %cst_36 = arith.constant 1.000000e+00 : f32
    %160 = vector.broadcast %cst_36 : f32 to vector<8x128xf32>
    %161 = arith.addf %160, %159 : vector<8x128xf32>
    %162 = arith.divf %160, %161 : vector<8x128xf32>
    %163 = vector.extract_strided_slice %162 {offsets = [0, 0], sizes = [8, 32], strides = [1, 1]} : vector<8x128xf32> to vector<8x32xf32>
    %164 = vector.extract_strided_slice %162 {offsets = [0, 32], sizes = [8, 32], strides = [1, 1]} : vector<8x128xf32> to vector<8x32xf32>
    %165 = vector.extract_strided_slice %162 {offsets = [0, 64], sizes = [8, 32], strides = [1, 1]} : vector<8x128xf32> to vector<8x32xf32>
    %cst_37 = arith.constant 2.000000e+00 : f32
    %166 = vector.broadcast %cst_37 : f32 to vector<8x32xf32>
    %167 = arith.mulf %166, %165 : vector<8x32xf32>
    %cst_38 = arith.constant 1.000000e+00 : f32
    %168 = vector.broadcast %cst_38 : f32 to vector<8x32xf32>
    %169 = arith.subf %167, %168 : vector<8x32xf32>
    %170 = vector.extract_strided_slice %162 {offsets = [0, 96], sizes = [8, 32], strides = [1, 1]} : vector<8x128xf32> to vector<8x32xf32>
    %171 = arith.mulf %164, %152 : vector<8x32xf32>
    %172 = arith.mulf %163, %169 : vector<8x32xf32>
    %173 = arith.addf %171, %172 : vector<8x32xf32>
    %174 = math.tanh %173 : vector<8x32xf32>
    %175 = arith.mulf %170, %174 : vector<8x32xf32>
    %cst_39 = arith.constant dense<0.000000e+00> : vector<8x128xf32>
    %176 = tpu.matmul %175, %3, %cst_39 {dimension_numbers = #tpu.dot_dimension_numbers<[1], [0], [0], [1], [0, 0, 1, 1], [], []>} : vector<8x32xf32>, vector<32x128xf32>, vector<8x128xf32> -> vector<8x128xf32>
    %177 = arith.addf %176, %4 : vector<8x128xf32>
    %178 = vector.extract_strided_slice %177 {offsets = [0, 0], sizes = [8, 2], strides = [1, 1]} : vector<8x128xf32> to vector<8x2xf32>
    %cst_40 = arith.constant dense<0xFF800000> : vector<8xf32>
    %179 = vector.multi_reduction <maximumf>, %178, %cst_40 [1] : vector<8x2xf32> to vector<8xf32>
    %180 = vector.shape_cast %179 : vector<8xf32> to vector<8x1xf32>
    %181 = vector.broadcast %180 : vector<8x1xf32> to vector<8x2xf32>
    %182 = arith.subf %178, %181 : vector<8x2xf32>
    %183 = math.exp %182 : vector<8x2xf32>
    %cst_41 = arith.constant dense<0.000000e+00> : vector<8xf32>
    %184 = vector.multi_reduction <add>, %183, %cst_41 [1] : vector<8x2xf32> to vector<8xf32>
    %185 = vector.shape_cast %184 : vector<8xf32> to vector<8x1xf32>
    %186 = vector.broadcast %185 : vector<8x1xf32> to vector<8x2xf32>
    %187 = arith.divf %183, %186 : vector<8x2xf32>
    %cst_42 = arith.constant 0.000000e+00 : f32
    %188 = vector.broadcast %cst_42 : f32 to vector<8x92xf32>
    %189 = tpu.concatenate %175, %178, %187, %188 in 1 : vector<8x32xf32>, vector<8x2xf32>, vector<8x2xf32>, vector<8x92xf32> -> vector<8x128xf32>
    %c0_43 = arith.constant 0 : index
    %c0_44 = arith.constant 0 : index
    %190 = vector.load %arg1[%c0_43, %c0_44] : memref<8x128xf32, #tpu.memory_space<vmem>>, vector<8x128xf32>
    tpu.vector_store %arg1[%c0_43, %c0_44], %189 {strides = array<i32>} : memref<8x128xf32, #tpu.memory_space<vmem>>, vector<8x128xf32>,
    return
  }
}

</mosaic_0001>

<bundles_post_ra>
// kernel: lstm_policy.1
= control target key start
LH: loop header
LB: loop body
LE: loop exit
PB: predicated region body
PF: predicated region fallthrough
CT: control target
= control target key end

     0   :  { %v1439_v3 = vmov 0.0|0.0   ;;  %vm1440_vm0 = vmmov 0   ;;  %v1441_v4 = vmov 0.0   ;;  %s1442_s21 = smov 64   ;;  %s1443_s22 = smov 32   ;;  %vm146_vm1 = vcmask 261120   ;;  %s1656_s0 = inlined_call_operand.vmem [shape: f32[264,128], index: 0, kind: input, shape index: {}]   ;;  %s1657_s1 = inlined_call_operand.vmem [shape: f32[8,128], index: 1, kind: output, shape index: {}]  }
   0x1   :  { %v16_v0 = vld [vmem:[%s1656_s0 + $0x40] sm:$0xff]  ;;  %v17_v1 = vld [vmem:[%s1656_s0 + $0x48] sm:$0xff]  ;;  %v18_v2 = vld [vmem:[%s1656_s0 + $0x50] sm:$0xff]  ;;  %1327 = vmatprep.subr.bf16.mxu1 %v1439_v3  ;;  %1204 = vmatprep.mubr.msk.f32.mxu1 %vm1440_vm0, %v1441_v4  ;;  %vm1028_vm2 = vcmask 15360   ;;  %vm1050_vm3 = vcmask 277504   ;;  %vm1052_vm4 = vcmask 293888  }
   0x2   :  { %v1295_v5 = vpack.c.bf16 %v17_v1, %v16_v0  ;;  %v19_v6 = vld [vmem:[%s1656_s0 + $0x58] sm:$0xff]  ;;  %v20_v8 = vld [vmem:[%s1656_s0 + $0x60] sm:$0xff]  ;;  %v21_v9 = vld [vmem:[%s1656_s0 + $0x68] sm:$0xff] }
   0x3   :  { %v1299_v7 = vpack.c.bf16 %v19_v6, %v18_v2  ;;  %v32_v10 = vld [vmem:[%s1656_s0 + $0xc0] sm:$0xff]  ;;  %v1303_v11 = vpack.c.bf16 %v21_v9, %v20_v8  ;;  %v22_v12 = vld [vmem:[%s1656_s0 + $0x70] sm:$0xff]  ;;  %v23_v13 = vld [vmem:[%s1656_s0 + $0x78] sm:$0xff] }
   0x4   :  { %1296 = vmatprep.subr.bf16.mxu0 %v1295_v5  ;;  %v33_v14 = vld [vmem:[%s1656_s0 + $0xc8] sm:$0xff]  ;;  %v34_v16 = vld [vmem:[%s1656_s0 + $0xd0] sm:$0xff]  ;;  %v35_v17 = vld [vmem:[%s1656_s0 + $0xd8] sm:$0xff]  ;;  %v1307_v20 = vpack.c.bf16 %v23_v13, %v22_v12 }
   0x5   :  { %1298 = vmatpush3.bf16.msra.mxu0 %v1295_v5  ;;  %v1488_v15 = vpack.c.bf16 %v33_v14, %v32_v10  ;;  %v8_v18 = vld [vmem:[%s1656_s0] sm:$0xff]  ;;  %v1500_v19 = vpack.c.bf16 %v35_v17, %v34_v16  ;;  %v25_v22 = vld [vmem:[%s1656_s0 + $0x88] sm:$0xff]  ;;  %v26_v24 = vld [vmem:[%s1656_s0 + $0x90] sm:$0xff] }
   0x6   :  { %1300 = vmatprep.subr.bf16.mxu0 %v1299_v7  ;;  %1184 = vmatprep.mubr.f32.mxu0 %v8_v18  ;;  %v24_v21 = vld [vmem:[%s1656_s0 + $0x80] sm:$0xff]  ;;  %v27_v25 = vld [vmem:[%s1656_s0 + $0x98] sm:$0xff]  ;;  %v29_v28 = vld [vmem:[%s1656_s0 + $0xa8] sm:$0xff] }
   0x7   :  { %1329 = vmatpush3.bf16.msra.mxu1 %v1488_v15  ;;  %v1311_v23 = vpack.c.bf16 %v25_v22, %v24_v21  ;;  %v1315_v26 = vpack.c.bf16 %v27_v25, %v26_v24  ;;  %v28_v27 = vld [vmem:[%s1656_s0 + $0xa0] sm:$0xff]  ;;  %v30_v30 = vld [vmem:[%s1656_s0 + $0xb0] sm:$0xff]  ;;  %v31_v31 = vld [vmem:[%s1656_s0 + $0xb8] sm:$0xff] }
   0x8   :  { %1330 = vmatprep.subr.bf16.mxu1 %v1439_v3  ;;  %v1319_v29 = vpack.c.bf16 %v29_v28, %v28_v27  ;;  %v1323_v32 = vpack.c.bf16 %v31_v31, %v30_v30  ;;  %v9_v33 = vld [vmem:[%s1656_s0 + $0x8] sm:$0xff]  ;;  %v10_v6 = vld [vmem:[%s1656_s0 + $0x10] sm:$0xff] }
   0x9   :  { %1302 = vmatpush3.bf16.msra.mxu0 %v1299_v7  ;;  %v11_v7 = vld [vmem:[%s1656_s0 + $0x18] sm:$0xff] }
   0xa   :  { %1304 = vmatprep.subr.bf16.mxu0 %v1303_v11 }
   0xb   :  { %1332 = vmatpush3.bf16.msra.mxu1 %v1500_v19 }
   0xc   :  { %1333 = vmatprep.subr.bf16.mxu1 %v1439_v3 }
   0xd   :  { %1306 = vmatpush3.bf16.msra.mxu0 %v1303_v11 }
   0xe   :  { %1308 = vmatprep.subr.bf16.mxu0 %v1307_v20  ;;  %1205 = vmatmul.mubr.f32.vlgmr.msra.gmra.mrb[0].mxu1 %v1441_v4 }
   0xf   :  { %1335 = vmatpush3.bf16.msra.mxu1 %v1488_v15  ;;  %1215 = vmatprep.mubr.msk.f32.mxu1 %vm1440_vm0, %v1441_v4 }
  0x10   :  { %1336 = vmatprep.subr.bf16.mxu1 %v1439_v3 }
  0x11   :  { %1310 = vmatpush3.bf16.msra.mxu0 %v1307_v20 }
  0x12   :  { %1312 = vmatprep.subr.bf16.mxu0 %v1311_v23 }
  0x13   :  { %1338 = vmatpush3.bf16.msra.mxu1 %v1500_v19 }
  0x14   :  { %1339 = vmatprep.subr.bf16.mxu1 %v1439_v3 }
  0x15   :  { %1314 = vmatpush3.bf16.msra.mxu0 %v1311_v23 }
  0x16   :  { %1316 = vmatprep.subr.bf16.mxu0 %v1315_v26 }
  0x19   :  { %1318 = vmatpush3.bf16.msra.mxu0 %v1315_v26 }
  0x1a   :  { %1320 = vmatprep.subr.bf16.mxu0 %v1319_v29 }
  0x1d   :  { %1322 = vmatpush3.bf16.msra.mxu0 %v1319_v29 }
  0x1e   :  { %1324 = vmatprep.subr.bf16.mxu0 %v1323_v32 }
  0x21   :  { %1326 = vmatpush3.bf16.msra.mxu0 %v1323_v32 }
  0x22   :  { %1357 = vmatprep.subr.bf16.mxu0 %v1439_v3 }
  0x24   :  { %1185 = vmatmul.mubr.f32.vlgmr.msra.gmra.mrb[0].mxu0 %v9_v33 }
  0x25   :  { %1359 = vmatpush3.bf16.msra.mxu0 %v1488_v15  ;;  %1187 = vmatprep.mubr.f32.mxu0 %v10_v6 }
  0x26   :  { %1360 = vmatprep.subr.bf16.mxu0 %v1439_v3 }
  0x28   :  { %1188 = vmatmul.mubr.f32.gmra.mrb[2].mxu0 %v11_v7 }
  0x29   :  { %1362 = vmatpush3.bf16.msra.mxu0 %v1500_v19 }
  0x2a   :  { %1369 = vmatprep.subr.bf16.mxu0 %v1439_v3 }
  0xe1   :  { %v216_v34 = vpop.f32.mrb[0].mxu1 }
  0xe2   :  { %v1206_v35 = vpop.f32.mrb[1].mxu1 }
  0xf7   :  { %v1186_v36 = vpop.f32.mrb[0].mxu0 }
  0xf8   :  { %v107_v37 = vpop.f32.mrb[1].mxu0 }
  0xf9   :  { %v220_v38 = vadd.f32 %v216_v34, %v107_v37 }
  0xfb   :  { %v1059_v39 = vmul.f32 -1.442695, %v220_v38  ;;  %v1189_v11 = vpop.f32.mrb[2].mxu0 }
  0xfc   :  { %v117_v12 = vpop.f32.mrb[3].mxu0 }
  0xfd   :  { %1387 = vpow2.f32 %v1059_v39 }
 0x107   :  { %v1388_v40 = vpop.eup %1387 }
 0x108   :  { %v224_v41 = vadd.f32 1.0, %v1388_v40 }
 0x10a   :  { %1389 = vrcp.f32 %v224_v41 }
 0x114   :  { %v1390_v42 = vpop.eup %1389 }
 0x115   :  { %v227_v43 = vmul.f32 2.0, %v1390_v42  ;;  %v229_v47 = vmul.f32 0.0, %v1390_v42 }
 0x117   :  { %v1060_v44 = vadd.f32 -1.0, %v227_v43 }
 0x119   :  { %231 = vrot.lane.b32.xlu0 %v1060_v44, %s1442_s21 }
 0x18b   :  { %v232_v45 = vpop.permute.xlu0 %231 }
 0x18c   :  { %v234_v46 = vmul.f32 %v1390_v42, %v232_v45 }
 0x18e   :  { %236 = vrot.lane.b32.xlu0 %v234_v46, %s1443_s22 }
 0x200   :  { %v237_v48 = vpop.permute.xlu0 %236 }
 0x201   :  { %v239_v49 = vadd.f32 %v237_v48, %v229_v47  ;;  %v12_v48 = vld [vmem:[%s1656_s0 + $0x20] sm:$0xff] }
 0x202   :  { %1190 = vmatprep.mubr.f32.mxu0 %v12_v48 }
 0x203   :  { %1391 = vtanh.f32 %v239_v49 }
 0x20d   :  { %v1392_v50 = vpop.eup %1391 }
 0x20e   :  { %242 = vrot.lane.b32.xlu1 %v1392_v50, %s1442_s21 }
 0x280   :  { %v243_v51 = vpop.permute.xlu1 %242 }
 0x281   :  { %v245_v52 = vmul.f32 %v1390_v42, %v243_v51 }
 0x283   :  { %247 = vrot.lane.b32.xlu1 %v245_v52, %s1443_s22 }
 0x2f5   :  { %v248_v53 = vpop.permute.xlu1 %247 }
 0x2f6   :  { %1216 = vmatmul.mubr.msk.f32.vlgmr.msra.gmra.mrb[2].mxu1 %vm146_vm1, %v248_v53 }
 0x2f7   :  { %1341 = vmatpush3.bf16.msra.mxu1 %v1488_v15  ;;  %1226 = vmatprep.mubr.msk.f32.mxu1 %vm1440_vm0, %v1441_v4 }
 0x2f8   :  { %1342 = vmatprep.subr.bf16.mxu1 %v1439_v3 }
 0x2fb   :  { %1344 = vmatpush3.bf16.msra.mxu1 %v1500_v19 }
 0x2fc   :  { %1345 = vmatprep.subr.bf16.mxu1 %v1439_v3 }
 0x3c9   :  { %v317_v54 = vpop.f32.mrb[2].mxu1 }
 0x3ca   :  { %v321_v55 = vadd.f32 %v1186_v36, %v317_v54  ;;  %v1217_v56 = vpop.f32.mrb[3].mxu1 }
 0x3cc   :  { %v1062_v57 = vmul.f32 -1.442695, %v321_v55 }
 0x3ce   :  { %1393 = vpow2.f32 %v1062_v57 }
 0x3d8   :  { %v1394_v58 = vpop.eup %1393 }
 0x3d9   :  { %v325_v59 = vadd.f32 1.0, %v1394_v58 }
 0x3db   :  { %1395 = vrcp.f32 %v325_v59 }
 0x3e5   :  { %v1396_v60 = vpop.eup %1395 }
 0x3e6   :  { %v328_v61 = vmul.f32 2.0, %v1396_v60  ;;  %v330_v1 = vmul.f32 %v1396_v60, %v239_v49  ;;  %v13_v49 = vld [vmem:[%s1656_s0 + $0x28] sm:$0xff] }
 0x3e7   :  { %1191 = vmatmul.mubr.f32.gmra.mrb[4].mxu0 %v13_v49 }
 0x3e8   :  { %v1063_v62 = vadd.f32 -1.0, %v328_v61 }
 0x3ea   :  { %332 = vrot.lane.b32.xlu0 %v1063_v62, %s1442_s21 }
 0x45c   :  { %v333_v63 = vpop.permute.xlu0 %332 }
 0x45d   :  { %v335_v0 = vmul.f32 %v1396_v60, %v333_v63 }
 0x45f   :  { %337 = vrot.lane.b32.xlu1 %v335_v0, %s1443_s22 }
 0x4ba   :  { %v1192_v53 = vpop.f32.mrb[4].mxu0 }
 0x4bb   :  { %v127_v54 = vpop.f32.mrb[5].mxu0 }
 0x4d1   :  { %v338_v2 = vpop.permute.xlu1 %337 }
 0x4d2   :  { %v340_v5 = vadd.f32 %v338_v2, %v330_v1 }
 0x4d4   :  { %1397 = vtanh.f32 %v340_v5 }
 0x4de   :  { %v1398_v8 = vpop.eup %1397 }
 0x4df   :  { %343 = vrot.lane.b32.xlu0 %v1398_v8, %s1442_s21  ;;  %v14_v8 = vld [vmem:[%s1656_s0 + $0x30] sm:$0xff] }
 0x4e0   :  { %1193 = vmatprep.mubr.f32.mxu0 %v14_v8 }
 0x551   :  { %v344_v9 = vpop.permute.xlu0 %343 }
 0x552   :  { %v346_v10 = vmul.f32 %v1396_v60, %v344_v9  ;;  %v15_v9 = vld [vmem:[%s1656_s0 + $0x38] sm:$0xff] }
 0x553   :  { %1194 = vmatmul.mubr.f32.gmra.mrb[6].mxu0 %v15_v9 }
 0x554   :  { %348 = vrot.lane.b32.xlu1 %v346_v10, %s1443_s22  ;;  %1259 = vmatprep.mubr.msk.f32.mxu0 %vm1440_vm0, %v1441_v4 }
 0x5c6   :  { %v349_v13 = vpop.permute.xlu1 %348 }
 0x5c7   :  { %1227 = vmatmul.mubr.msk.f32.vlgmr.msra.gmra.mrb[4].mxu1 %vm146_vm1, %v349_v13 }
 0x5c8   :  { %1347 = vmatpush3.bf16.msra.mxu1 %v1488_v15  ;;  %1237 = vmatprep.mubr.msk.f32.mxu1 %vm1440_vm0, %v1441_v4 }
 0x5c9   :  { %1348 = vmatprep.subr.bf16.mxu1 %v1439_v3 }
 0x5cc   :  { %1350 = vmatpush3.bf16.msra.mxu1 %v1500_v19 }
 0x5cd   :  { %1351 = vmatprep.subr.bf16.mxu1 %v1439_v3 }
 0x626   :  { %v1195_v13 = vpop.f32.mrb[6].mxu0 }
 0x69a   :  { %v418_v14 = vpop.f32.mrb[4].mxu1 }
 0x69b   :  { %v422_v16 = vadd.f32 %v418_v14, %v117_v12  ;;  %v1228_v17 = vpop.f32.mrb[5].mxu1  ;;  %v137_v14 = vpop.f32.mrb[7].mxu0 }
 0x69d   :  { %v1065_v18 = vmul.f32 -1.442695, %v422_v16 }
 0x69f   :  { %1399 = vpow2.f32 %v1065_v18 }
 0x6a9   :  { %v1400_v20 = vpop.eup %1399 }
 0x6aa   :  { %v426_v21 = vadd.f32 1.0, %v1400_v20 }
 0x6ac   :  { %1401 = vrcp.f32 %v426_v21 }
 0x6b6   :  { %v1402_v22 = vpop.eup %1401 }
 0x6b7   :  { %v429_v23 = vmul.f32 2.0, %v1402_v22  ;;  %v431_v27 = vmul.f32 %v1402_v22, %v340_v5 }
 0x6b9   :  { %v1066_v24 = vadd.f32 -1.0, %v429_v23 }
 0x6bb   :  { %433 = vrot.lane.b32.xlu0 %v1066_v24, %s1442_s21 }
 0x72d   :  { %v434_v25 = vpop.permute.xlu0 %433 }
 0x72e   :  { %v436_v26 = vmul.f32 %v1402_v22, %v434_v25 }
 0x730   :  { %438 = vrot.lane.b32.xlu1 %v436_v26, %s1443_s22 }
 0x7a2   :  { %v439_v28 = vpop.permute.xlu1 %438 }
 0x7a3   :  { %v441_v29 = vadd.f32 %v439_v28, %v431_v27 }
 0x7a5   :  { %1403 = vtanh.f32 %v441_v29 }
 0x7af   :  { %v1404_v30 = vpop.eup %1403 }
 0x7b0   :  { %444 = vrot.lane.b32.xlu0 %v1404_v30, %s1442_s21 }
 0x822   :  { %v445_v31 = vpop.permute.xlu0 %444 }
 0x823   :  { %v447_v32 = vmul.f32 %v1402_v22, %v445_v31 }
 0x825   :  { %449 = vrot.lane.b32.xlu1 %v447_v32, %s1443_s22 }
 0x897   :  { %v450_v33 = vpop.permute.xlu1 %449 }
 0x898   :  { %1238 = vmatmul.mubr.msk.f32.vlgmr.msra.gmra.mrb[6].mxu1 %vm146_vm1, %v450_v33 }
 0x899   :  { %1353 = vmatpush3.bf16.msra.mxu1 %v1488_v15  ;;  %1248 = vmatprep.mubr.msk.f32.mxu1 %vm1440_vm0, %v1441_v4 }
 0x89a   :  { %1354 = vmatprep.subr.bf16.mxu1 %v1439_v3 }
 0x89d   :  { %1356 = vmatpush3.bf16.msra.mxu1 %v1500_v19 }
 0x89e   :  { %1363 = vmatprep.subr.bf16.mxu1 %v1439_v3 }
 0x96b   :  { %v519_v34 = vpop.f32.mrb[6].mxu1 }
 0x96c   :  { %v523_v35 = vadd.f32 %v1189_v11, %v519_v34  ;;  %v1239_v36 = vpop.f32.mrb[7].mxu1 }
 0x96e   :  { %v1068_v37 = vmul.f32 -1.442695, %v523_v35 }
 0x970   :  { %1405 = vpow2.f32 %v1068_v37 }
 0x97a   :  { %v1406_v38 = vpop.eup %1405 }
 0x97b   :  { %v527_v39 = vadd.f32 1.0, %v1406_v38 }
 0x97d   :  { %1407 = vrcp.f32 %v527_v39 }
 0x987   :  { %v1408_v40 = vpop.eup %1407 }
 0x988   :  { %v530_v41 = vmul.f32 2.0, %v1408_v40  ;;  %v532_v45 = vmul.f32 %v1408_v40, %v441_v29 }
 0x98a   :  { %v1069_v42 = vadd.f32 -1.0, %v530_v41 }
 0x98c   :  { %534 = vrot.lane.b32.xlu0 %v1069_v42, %s1442_s21 }
 0x9fe   :  { %v535_v43 = vpop.permute.xlu0 %534 }
 0x9ff   :  { %v537_v44 = vmul.f32 %v1408_v40, %v535_v43 }
 0xa01   :  { %539 = vrot.lane.b32.xlu1 %v537_v44, %s1443_s22 }
 0xa73   :  { %v540_v46 = vpop.permute.xlu1 %539 }
 0xa74   :  { %v542_v47 = vadd.f32 %v540_v46, %v532_v45 }
 0xa76   :  { %1409 = vtanh.f32 %v542_v47 }
 0xa80   :  { %v1410_v50 = vpop.eup %1409 }
 0xa81   :  { %545 = vrot.lane.b32.xlu0 %v1410_v50, %s1442_s21 }
 0xaf3   :  { %v546_v51 = vpop.permute.xlu0 %545 }
 0xaf4   :  { %v548_v52 = vmul.f32 %v1408_v40, %v546_v51 }
 0xaf6   :  { %550 = vrot.lane.b32.xlu1 %v548_v52, %s1443_s22 }
 0xb68   :  { %v551_v55 = vpop.permute.xlu1 %550 }
 0xb69   :  { %1249 = vmatmul.mubr.msk.f32.vlgmr.msra.gmra.mrb[8].mxu1 %vm146_vm1, %v551_v55 }
 0xb6a   :  { %1365 = vmatpush3.bf16.msra.mxu1 %v1488_v15  ;;  %1270 = vmatprep.mubr.msk.f32.mxu1 %vm1440_vm0, %v1441_v4 }
 0xb6b   :  { %1366 = vmatprep.subr.bf16.mxu1 %v1439_v3 }
 0xb6e   :  { %1368 = vmatpush3.bf16.msra.mxu1 %v1500_v19 }
 0xb6f   :  { %1375 = vmatprep.subr.bf16.mxu1 %v1439_v3 }
 0xc3c   :  { %v620_v56 = vpop.f32.mrb[8].mxu1 }
 0xc3d   :  { %v624_v57 = vadd.f32 %v620_v56, %v127_v54  ;;  %v1250_v58 = vpop.f32.mrb[9].mxu1 }
 0xc3f   :  { %v1071_v59 = vmul.f32 -1.442695, %v624_v57 }
 0xc41   :  { %1411 = vpow2.f32 %v1071_v59 }
 0xc4b   :  { %v1412_v60 = vpop.eup %1411 }
 0xc4c   :  { %v628_v61 = vadd.f32 1.0, %v1412_v60 }
 0xc4e   :  { %1413 = vrcp.f32 %v628_v61 }
 0xc58   :  { %v1414_v62 = vpop.eup %1413 }
 0xc59   :  { %v631_v63 = vmul.f32 2.0, %v1414_v62  ;;  %v633_v5 = vmul.f32 %v1414_v62, %v542_v47 }
 0xc5b   :  { %v1072_v0 = vadd.f32 -1.0, %v631_v63 }
 0xc5d   :  { %635 = vrot.lane.b32.xlu0 %v1072_v0, %s1442_s21 }
 0xccf   :  { %v636_v1 = vpop.permute.xlu0 %635 }
 0xcd0   :  { %v638_v2 = vmul.f32 %v1414_v62, %v636_v1  ;;  %v36_v1 = vld [vmem:[%s1656_s0 + $0xe0] sm:$0xff] }
 0xcd2   :  { %640 = vrot.lane.b32.xlu1 %v638_v2, %s1443_s22  ;;  %v37_v2 = vld [vmem:[%s1656_s0 + $0xe8] sm:$0xff] }
 0xd44   :  { %v641_v6 = vpop.permute.xlu1 %640 }
 0xd45   :  { %v643_v7 = vadd.f32 %v641_v6, %v633_v5  ;;  %v38_v5 = vld [vmem:[%s1656_s0 + $0xf0] sm:$0xff]  ;;  %v1376_v6 = vpack.c.bf16 %v37_v2, %v36_v1 }
 0xd47   :  { %1415 = vtanh.f32 %v643_v7 }
 0xd51   :  { %v1416_v10 = vpop.eup %1415 }
 0xd52   :  { %646 = vrot.lane.b32.xlu0 %v1416_v10, %s1442_s21 }
 0xdc4   :  { %v647_v11 = vpop.permute.xlu0 %646 }
 0xdc5   :  { %v649_v12 = vmul.f32 %v1414_v62, %v647_v11 }
 0xdc7   :  { %651 = vrot.lane.b32.xlu1 %v649_v12, %s1443_s22 }
 0xe39   :  { %v652_v16 = vpop.permute.xlu1 %651 }
 0xe3a   :  { %1260 = vmatmul.mubr.msk.f32.vlgmr.msra.gmra.mrb[8].mxu0 %vm146_vm1, %v652_v16 }
 0xe3b   :  { %1371 = vmatpush3.bf16.msra.mxu0 %v1488_v15  ;;  %1281 = vmatprep.mubr.msk.f32.mxu0 %vm1440_vm0, %v1441_v4 }
 0xe3c   :  { %1372 = vmatprep.subr.bf16.mxu0 %v1439_v3 }
 0xe3f   :  { %1374 = vmatpush3.bf16.msra.mxu0 %v1500_v19 }
 0xf0d   :  { %v721_v17 = vpop.f32.mrb[8].mxu0 }
 0xf0e   :  { %v725_v18 = vadd.f32 %v1192_v53, %v721_v17  ;;  %v1261_v20 = vpop.f32.mrb[9].mxu0 }
 0xf10   :  { %v1074_v21 = vmul.f32 -1.442695, %v725_v18 }
 0xf12   :  { %1417 = vpow2.f32 %v1074_v21 }
 0xf1c   :  { %v1418_v22 = vpop.eup %1417 }
 0xf1d   :  { %v729_v23 = vadd.f32 1.0, %v1418_v22 }
 0xf1f   :  { %1419 = vrcp.f32 %v729_v23 }
 0xf29   :  { %v1420_v24 = vpop.eup %1419 }
 0xf2a   :  { %v732_v25 = vmul.f32 2.0, %v1420_v24  ;;  %v734_v28 = vmul.f32 %v1420_v24, %v643_v7  ;;  %v39_v7 = vld [vmem:[%s1656_s0 + $0xf8] sm:$0xff] }
 0xf2b   :  { %v1379_v8 = vpack.c.bf16 %v39_v7, %v38_v5 }
 0xf2c   :  { %v1075_v26 = vadd.f32 -1.0, %v732_v25 }
 0xf2e   :  { %736 = vrot.lane.b32.xlu0 %v1075_v26, %s1442_s21 }
 0xfa0   :  { %v737_v15 = vpop.permute.xlu0 %736 }
 0xfa1   :  { %v739_v27 = vmul.f32 %v1420_v24, %v737_v15 }
 0xfa3   :  { %741 = vrot.lane.b32.xlu1 %v739_v27, %s1443_s22 }
0x1015   :  { %v742_v29 = vpop.permute.xlu1 %741 }
0x1016   :  { %v744_v19 = vadd.f32 %v742_v29, %v734_v28 }
0x1018   :  { %1421 = vtanh.f32 %v744_v19 }
0x1022   :  { %v1422_v30 = vpop.eup %1421 }
0x1023   :  { %747 = vrot.lane.b32.xlu0 %v1422_v30, %s1442_s21 }
0x1095   :  { %v748_v31 = vpop.permute.xlu0 %747 }
0x1096   :  { %v750_v32 = vmul.f32 %v1420_v24, %v748_v31 }
0x1098   :  { %752 = vrot.lane.b32.xlu1 %v750_v32, %s1443_s22 }
0x110a   :  { %v753_v33 = vpop.permute.xlu1 %752 }
0x110b   :  { %1271 = vmatmul.mubr.msk.f32.vlgmr.msra.gmra.mrb[10].mxu1 %vm146_vm1, %v753_v33 }
0x110c   :  { %1292 = vmatprep.mubr.msk.f32.mxu1 %vm1440_vm0, %v1441_v4  ;;  %1377 = vmatpush3.bf16.msra.mxu1 %v1376_v6 }
0x110d   :  { %1378 = vmatprep.subr.bf16.mxu1 %v1439_v3 }
0x1110   :  { %1380 = vmatpush3.bf16.msra.mxu1 %v1379_v8 }
0x11de   :  { %v822_v34 = vpop.f32.mrb[10].mxu1 }
0x11df   :  { %v826_v35 = vadd.f32 %v822_v34, %v137_v14  ;;  %v1272_v36 = vpop.f32.mrb[11].mxu1 }
0x11e1   :  { %v1077_v37 = vmul.f32 -1.442695, %v826_v35 }
0x11e3   :  { %1423 = vpow2.f32 %v1077_v37 }
0x11ed   :  { %v1424_v38 = vpop.eup %1423 }
0x11ee   :  { %v830_v39 = vadd.f32 1.0, %v1424_v38 }
0x11f0   :  { %1425 = vrcp.f32 %v830_v39 }
0x11fa   :  { %v1426_v40 = vpop.eup %1425 }
0x11fb   :  { %v833_v41 = vmul.f32 2.0, %v1426_v40  ;;  %v835_v45 = vmul.f32 %v1426_v40, %v744_v19 }
0x11fd   :  { %v1078_v42 = vadd.f32 -1.0, %v833_v41 }
0x11ff   :  { %837 = vrot.lane.b32.xlu0 %v1078_v42, %s1442_s21 }
0x1271   :  { %v838_v43 = vpop.permute.xlu0 %837 }
0x1272   :  { %v840_v44 = vmul.f32 %v1426_v40, %v838_v43 }
0x1274   :  { %842 = vrot.lane.b32.xlu1 %v840_v44, %s1443_s22 }
0x12e6   :  { %v843_v46 = vpop.permute.xlu1 %842 }
0x12e7   :  { %v845_v4 = vadd.f32 %v843_v46, %v835_v45 }
0x12e9   :  { %1427 = vtanh.f32 %v845_v4 }
0x12f3   :  { %v1428_v47 = vpop.eup %1427 }
0x12f4   :  { %848 = vrot.lane.b32.xlu0 %v1428_v47, %s1442_s21 }
0x1366   :  { %v849_v48 = vpop.permute.xlu0 %848 }
0x1367   :  { %v851_v49 = vmul.f32 %v1426_v40, %v849_v48 }
0x1369   :  { %853 = vrot.lane.b32.xlu1 %v851_v49, %s1443_s22 }
0x13db   :  { %v854_v50 = vpop.permute.xlu1 %853 }
0x13dc   :  { %1282 = vmatmul.mubr.msk.f32.vlgmr.msra.gmra.mrb[10].mxu0 %vm146_vm1, %v854_v50 }
0x14af   :  { %v923_v51 = vpop.f32.mrb[10].mxu0 }
0x14b0   :  { %v927_v52 = vadd.f32 %v1195_v13, %v923_v51  ;;  %v1283_v53 = vpop.f32.mrb[11].mxu0  ;;  %v40_v13 = vld [vmem:[%s1656_s0 + $0x100] sm:$0xff]  ;;  %s1444_s0 = smov 34  }
0x14b2   :  { %v1080_v54 = vmul.f32 -1.442695, %v927_v52 }
0x14b4   :  { %1429 = vpow2.f32 %v1080_v54 }
0x14be   :  { %v1430_v55 = vpop.eup %1429 }
0x14bf   :  { %v931_v56 = vadd.f32 1.0, %v1430_v55 }
0x14c1   :  { %1431 = vrcp.f32 %v931_v56 }
0x14cb   :  { %v1432_v57 = vpop.eup %1431 }
0x14cc   :  { %v934_v58 = vmul.f32 2.0, %v1432_v57  ;;  %v936_v62 = vmul.f32 %v1432_v57, %v845_v4 }
0x14ce   :  { %v1081_v59 = vadd.f32 -1.0, %v934_v58 }
0x14d0   :  { %938 = vrot.lane.b32.xlu0 %v1081_v59, %s1442_s21 }
0x1542   :  { %v939_v60 = vpop.permute.xlu0 %938 }
0x1543   :  { %v941_v61 = vmul.f32 %v1432_v57, %v939_v60 }
0x1545   :  { %943 = vrot.lane.b32.xlu1 %v941_v61, %s1443_s22 }
0x15b7   :  { %v944_v63 = vpop.permute.xlu1 %943 }
0x15b8   :  { %v946_v0 = vadd.f32 %v944_v63, %v936_v62 }
0x15ba   :  { %1433 = vtanh.f32 %v946_v0 }
0x15c4   :  { %v1434_v9 = vpop.eup %1433 }
0x15c5   :  { %949 = vrot.lane.b32.xlu0 %v1434_v9, %s1442_s21 }
0x1637   :  { %v950_v10 = vpop.permute.xlu0 %949 }
0x1638   :  { %v952_v11 = vmul.f32 %v1432_v57, %v950_v10 }
0x163a   :  { %954 = vrot.lane.b32.xlu1 %v952_v11, %s1443_s22 }
0x16ac   :  { %v955_v12 = vpop.permute.xlu1 %954 }
0x16ad   :  { %1293 = vmatmul.mubr.msk.f32.vlgmr.msra.gmra.mrb[12].mxu1 %vm146_vm1, %v955_v12 }
0x1780   :  { %v1024_v14 = vpop.f32.mrb[12].mxu1 }
0x1781   :  { %v1025_v16 = vadd.f32 %v1024_v14, %v40_v13  ;;  %v1294_v17 = vpop.f32.mrb[13].mxu1 }
0x1783   :  { %v1029_v3 = vsel %vm1028_vm2, %v1025_v16, -inf }
0x1784   :  { %1030 = vmax.xlane.f32.xlu0 %v1029_v3 }
0x179a   :  { %1042 = vrot.lane.b32.xlu0 %v1025_v16, %s1443_s22 }
0x1811   :  { %v1031_v18 = vpop.xlane.xlu0 %1030 }
0x1812   :  { %v1032_v20 = vsub.f32 %v1025_v16, %v1031_v18 }
0x1814   :  { %v1033_v21 = vmul.f32 1.442695, %v1032_v20 }
0x1815   :  { %v1043_v15 = vpop.permute.xlu0 %1042 }
0x1816   :  { %1435 = vpow2.f32 %v1033_v21  ;;  %v1049_v27 = vsel %vm146_vm1, %v955_v12, %v1043_v15 }
0x1820   :  { %v1436_v22 = vpop.eup %1435 }
0x1821   :  { %v1035_v23 = vsel %vm1028_vm2, %v1436_v22, 0.0 }
0x1822   :  { %1036 = vadd.xlane.f32.xlu1 %v1035_v23 }
0x18af   :  { %v1037_v24 = vpop.xlane.xlu1 %1036 }
0x18b0   :  { %1437 = vrcp.f32 %v1037_v24 }
0x18ba   :  { %v1438_v25 = vpop.eup %1437 }
0x18bb   :  { %v1039_v26 = vmul.f32 %v1438_v25, %v1436_v22 }
0x18bd   :  { %1046 = vrot.lane.b32.xlu1 %v1039_v26, %s1444_s0 }
0x192f   :  { %v1047_v28 = vpop.permute.xlu1 %1046 }
0x1930   :  { %v1051_v29 = vsel %vm1050_vm3, %v1049_v27, %v1047_v28 }
0x1931   :  { %v1053_v19 = vsel %vm1052_vm4, %v1051_v29, 0.0 }
0x1932   :  { %1054 = vst [vmem:[%s1657_s1] sm:$0xff] %v1053_v19 }

</bundles_post_ra>
